<compile_context>
chip_gen: v6e
topology: v6e:2x2x1
jax: 0.10.0
libtpu: 0.0.40
codegen_flags: <defaults>
</compile_context>

<pallas_src>
import functools

import jax
import jax.numpy as jnp
from jax import lax
from jax.experimental import pallas as pl
from jax.experimental.pallas import tpu as pltpu


def _round_up(x, m):
    return (x + m - 1) // m * m


# ----------------------------------------------------------------------------
# Pallas kernel: one (batch, time-tile) block of the fused TemporalBlock
# ----------------------------------------------------------------------------
def temporal_block_kernel(x_ref, w1r_ref, b1r_ref, w2_ref, b2_ref,
                          out_ref, xcarry_ref, hcarry_ref,
                          *, TL, K, DIL, PAD, COUT_P, n_tb):
    # x_ref   : (1, TL, Cin_p)        bf16  current batch element / time tile
    # w1r_ref : (K*Cin_p, 2*Cout_p)   bf16  [conv1 taps | 1x1 residual on last tap]
    # b1r_ref : (1, 2*Cout_p)         f32   [b1 | bd]
    # w2_ref  : (K*Cout_p, Cout_p)    bf16  stacked conv2 taps
    # b2_ref  : (1, Cout_p)           f32
    # out_ref : (1, TL, Cout_p)       f32
    # xcarry_ref / hcarry_ref : (PAD, C*_p) f32 VMEM carry of the causal halo
    t = pl.program_id(1)

    x = x_ref[0].astype(jnp.float32)            # (TL, Cin_p)

    if PAD > 0:
        @pl.when(t == 0)
        def _zero_carries():                    # causal zero pad at sequence start
            xcarry_ref[...] = jnp.zeros_like(xcarry_ref)
            hcarry_ref[...] = jnp.zeros_like(hcarry_ref)

    # ---- conv1 (causal dilated) + residual 1x1 conv : ONE MXU matmul --------
    xc = jnp.concatenate([xcarry_ref[...], x], axis=0) if PAD > 0 else x
    s1 = jnp.concatenate([xc[j * DIL:j * DIL + TL, :] for j in range(K)],
                         axis=1).astype(jnp.bfloat16)            # (TL, K*Cin_p)
    fused = jnp.dot(s1, w1r_ref[...],
                    preferred_element_type=jnp.float32) + b1r_ref[...]
    h = jnp.maximum(fused[:, :COUT_P], 0.0)     # relu1; dropout1 identity at inference
    res = fused[:, COUT_P:]                     # downsample(x) + bd (or identity path)
    # TODO(synk): training-mode dropout (pltpu.prng_random_bits mask) not implemented.

    # ---- conv2 (causal dilated) : one MXU matmul ----------------------------
    hc = jnp.concatenate([hcarry_ref[...], h], axis=0) if PAD > 0 else h
    s2 = jnp.concatenate([hc[j * DIL:j * DIL + TL, :] for j in range(K)],
                         axis=1).astype(jnp.bfloat16)            # (TL, K*Cout_p)
    out2 = jnp.maximum(
        jnp.dot(s2, w2_ref[...], preferred_element_type=jnp.float32)
        + b2_ref[...], 0.0)                                      # relu2 (+dropout id)

    # ---- final ReLU(out + res), lane-dense store ----------------------------
    out_ref[0] = jnp.maximum(out2 + res, 0.0).astype(out_ref.dtype)

    # ---- carry the left halo to the next time tile of this batch element ----
    if PAD > 0 and n_tb > 1:
        xcarry_ref[...] = x[TL - PAD:, :]
        hcarry_ref[...] = h[TL - PAD:, :]


# ----------------------------------------------------------------------------
# Wrapper
# ----------------------------------------------------------------------------
def _pick_time_tile(L, PAD, cap=1024):
    best = None
    t = 16
    while t <= min(L, cap):
        if L % t == 0 and t >= PAD:
            best = t
        t += 16
    return best if best is not None else L


def temporal_block_pallas(x_ncl, w1, b1, w2, b2, wd, bd, *,
                          kernel_size, dilation, padding, time_tile=None):
    """x_ncl: (N, C_in, L) f32; weights in torch layout (C_out, C_in, K)."""
    N, C_in, L = x_ncl.shape
    C_out = w1.shape[0]
    K, DIL, PAD = kernel_size, dilation, padding
    assert PAD == (K - 1) * DIL, "standard TCN causal padding assumed"

    if wd is None:   # n_inputs == n_outputs -> identity residual in the module
        wd = jnp.eye(C_out, dtype=jnp.float32)[:, :, None]
        bd = jnp.zeros((C_out,), jnp.float32)

    Cin_p = _round_up(C_in, 128)      # lane-dense channel padding
    Cout_p = _round_up(C_out, 128)

    TL = time_tile if time_tile is not None else _pick_time_tile(L, PAD)
    assert L % TL == 0, (L, TL)
    n_tb = L // TL
    if n_tb > 1:
        assert TL >= PAD, "time tile must cover the causal halo"

    # ---- layout glue (NCL -> NLC, channel pad to lane width, bf16 inputs) ---
    # TODO(synk): these transposes/pads are extra XLA HBM passes; a real model
    # would keep activations in padded-NLC bf16 end to end.
    x_nlc = jnp.transpose(x_ncl, (0, 2, 1)).astype(jnp.bfloat16)
    x_nlc = jnp.pad(x_nlc, ((0, 0), (0, 0), (0, Cin_p - C_in)))

    def stack_w(w, cin, cin_p):  # torch (C_out, cin, K) -> (K*cin_p, Cout_p) f32
        wk = jnp.transpose(w, (2, 1, 0)).astype(jnp.float32)     # (K, cin, C_out)
        wk = jnp.pad(wk, ((0, 0), (0, cin_p - cin), (0, Cout_p - C_out)))
        return wk.reshape(K * cin_p, Cout_p)

    w1_k = stack_w(w1, C_in, Cin_p)                              # (K*Cin_p, Cout_p)
    w2_k = stack_w(w2, C_out, Cout_p).astype(jnp.bfloat16)       # (K*Cout_p, Cout_p)

    # Fold the 1x1 residual conv into the conv1 matmul: the last tap (j=K-1) of
    # the causal dilated conv reads x[t], so the residual weight lives on the
    # last Cin_p rows of K*Cin_p, in an extra Cout_p-wide column block.
    wd_pad = jnp.pad(jnp.transpose(wd[:, :, 0], (1, 0)).astype(jnp.float32),
                     ((0, Cin_p - C_in), (0, Cout_p - C_out)))   # (Cin_p, Cout_p)
    wd_block = jnp.zeros((K * Cin_p, Cout_p), jnp.float32)
    wd_block = wd_block.at[(K - 1) * Cin_p:, :].set(wd_pad)
    w1r_k = jnp.concatenate([w1_k, wd_block], axis=1).astype(jnp.bfloat16)

    def pad_b(b):
        return jnp.pad(b.astype(jnp.float32), (0, Cout_p - C_out)).reshape(1, Cout_p)

    b1r_k = jnp.concatenate([pad_b(b1), pad_b(bd)], axis=1)      # (1, 2*Cout_p)
    b2_k = pad_b(b2)

    kernel = functools.partial(temporal_block_kernel, TL=TL, K=K, DIL=DIL,
                               PAD=PAD, COUT_P=Cout_p, n_tb=n_tb)

    const_w = lambda b, t: (0, 0)
    grid_spec = pltpu.PrefetchScalarGridSpec(
        num_scalar_prefetch=0,
        grid=(N, n_tb),
        in_specs=[
            pl.BlockSpec((1, TL, Cin_p), lambda b, t: (b, t, 0)),    # x tile
            pl.BlockSpec((K * Cin_p, 2 * Cout_p), const_w),          # w1 | wd
            pl.BlockSpec((1, 2 * Cout_p), const_w),                  # b1 | bd
            pl.BlockSpec((K * Cout_p, Cout_p), const_w),             # w2
            pl.BlockSpec((1, Cout_p), const_w),                      # b2
        ],
        out_specs=pl.BlockSpec((1, TL, Cout_p), lambda b, t: (b, t, 0)),
        scratch_shapes=[
            pltpu.VMEM((max(PAD, 1), Cin_p), jnp.float32),   # x halo carry
            pltpu.VMEM((max(PAD, 1), Cout_p), jnp.float32),  # h halo carry
        ],
    )

    out_nlc = pl.pallas_call(
        kernel,
        out_shape=jax.ShapeDtypeStruct((N, L, Cout_p), jnp.float32),
        grid_spec=grid_spec,
        compiler_params=pltpu.CompilerParams(
            dimension_semantics=("parallel", "arbitrary")),
    )(x_nlc, w1r_k, b1r_k, w2_k, b2_k)

    # Strip channel padding, back to PyTorch NCL layout.
    return jnp.transpose(out_nlc[:, :, :C_out], (0, 2, 1))


# ----------------------------------------------------------------------------
# Pure-JAX reference (mirrors the PyTorch forward exactly) for verification
# ----------------------------------------------------------------------------
def temporal_block_ref(x_ncl, w1, b1, w2, b2, wd, bd, *,
                       kernel_size, dilation, padding):
    def conv1d(x, w, b, dil, pad):
        y = lax.conv_general_dilated(
            x, w, window_strides=(1,), padding=[(pad, pad)],
            rhs_dilation=(dil,),
            dimension_numbers=('NCH', 'OIH', 'NCH'))
        return y + b[None, :, None]

    out = conv1d(x_ncl, w1, b1, dilation, padding)
    out = out[:, :, :-padding] if padding > 0 else out          # chomp1
    out = jnp.maximum(out, 0.0)                                  # relu1 (+dropout id)
    out = conv1d(out, w2, b2, dilation, padding)
    out = out[:, :, :-padding] if padding > 0 else out          # chomp2
    out = jnp.maximum(out, 0.0)                                  # relu2 (+dropout id)
    res = conv1d(x_ncl, wd, bd, 1, 0)                            # downsample 1x1
    if res.shape[2] != out.shape[2]:
        res = res[:, :, -out.shape[2]:]
    return jnp.maximum(out + res, 0.0)


# ----------------------------------------------------------------------------
# Deterministic parameter setup (weight_norm reparameterization, as in module)
# ----------------------------------------------------------------------------
def make_weight_norm_conv(key, c_out, c_in, k):
    kv, kb = jax.random.split(key)
    v = 0.01 * jax.random.normal(kv, (c_out, c_in, k), jnp.float32)
    g = jnp.sqrt(jnp.sum(v * v, axis=(1, 2)))
    w = g[:, None, None] * v / jnp.sqrt(jnp.sum(v * v, axis=(1, 2),
                                                keepdims=True))
    bound = 1.0 / jnp.sqrt(c_in * k)
    b = jax.random.uniform(kb, (c_out,), jnp.float32, -bound, bound)
    return w, b


if __name__ == "__main__":
    # TCN block: n_inputs=4, n_outputs=8, kernel_size=3, stride=1, dilation=2,
    # padding=(k-1)*dilation=4, sequence length 64, batch 2.
    N, C_IN, C_OUT, L = 2, 4, 8, 64
    K, DIL = 3, 2
    PAD = (K - 1) * DIL

    key = jax.random.PRNGKey(0)
    kx, k1, k2, kd = jax.random.split(key, 4)

    x = jax.random.normal(kx, (N, C_IN, L), jnp.float32)
    w1, b1 = make_weight_norm_conv(k1, C_OUT, C_IN, K)
    w2, b2 = make_weight_norm_conv(k2, C_OUT, C_OUT, K)
    kdw, kdb = jax.random.split(kd)
    wd = 0.01 * jax.random.normal(kdw, (C_OUT, C_IN, 1), jnp.float32)
    bd = jax.random.uniform(kdb, (C_OUT,), jnp.float32,
                            -1.0 / jnp.sqrt(C_IN), 1.0 / jnp.sqrt(C_IN))

    ref = jax.block_until_ready(
        temporal_block_ref(x, w1, b1, w2, b2, wd, bd,
                           kernel_size=K, dilation=DIL, padding=PAD))

    # Multi-time-tile path: exercises the causal halo carry + pipelined grid.
    out = jax.block_until_ready(
        temporal_block_pallas(x, w1, b1, w2, b2, wd, bd,
                              kernel_size=K, dilation=DIL, padding=PAD,
                              time_tile=16))
    assert out.shape == (N, C_OUT, L), out.shape
    assert jnp.allclose(out, ref, atol=2e-2, rtol=2e-2), \
        float(jnp.max(jnp.abs(out - ref)))

    # Auto-tiled path (single time tile per batch element).
    out2 = jax.block_until_ready(
        temporal_block_pallas(x, w1, b1, w2, b2, wd, bd,
                              kernel_size=K, dilation=DIL, padding=PAD))
    assert jnp.allclose(out2, ref, atol=2e-2, rtol=2e-2), \
        float(jnp.max(jnp.abs(out2 - ref)))

    print("KERNEL_OK")
</pallas_src>

<mosaic_0001>
module attributes {stable_mosaic.version = 11 : i64} {
  func.func @temporal_block_kernel(%arg0: i32, %arg1: i32, %arg2: memref<1x16x128xbf16, #tpu.memory_space<vmem>>, %arg3: memref<384x256xbf16, #tpu.memory_space<vmem>>, %arg4: memref<1x256xf32, #tpu.memory_space<vmem>>, %arg5: memref<384x128xbf16, #tpu.memory_space<vmem>>, %arg6: memref<1x128xf32, #tpu.memory_space<vmem>>, %arg7: memref<1x16x128xf32, #tpu.memory_space<vmem>>, %arg8: memref<4x128xf32, #tpu.memory_space<vmem>>, %arg9: memref<4x128xf32, #tpu.memory_space<vmem>>) attributes {dimension_semantics = [#tpu.dimension_semantics<parallel>, #tpu.dimension_semantics<arbitrary>], iteration_bounds = array<i64: 2, 4>, scalar_prefetch = 0 : i64, scratch_operands = 2 : i64, tpu.core_type = #tpu.core_type<tc>, window_params = [{transform_indices = @transform_0, window_bounds = array<i64: 1, 16, 128>}, {pipeline_mode = #tpu.pipeline_mode<synchronous>, transform_indices = @transform_1, window_bounds = array<i64: 384, 256>}, {pipeline_mode = #tpu.pipeline_mode<synchronous>, transform_indices = @transform_2, window_bounds = array<i64: 1, 256>}, {pipeline_mode = #tpu.pipeline_mode<synchronous>, transform_indices = @transform_3, window_bounds = array<i64: 384, 128>}, {pipeline_mode = #tpu.pipeline_mode<synchronous>, transform_indices = @transform_4, window_bounds = array<i64: 1, 128>}, {transform_indices = @transform_5, window_bounds = array<i64: 1, 16, 128>}]} {
    %c0 = arith.constant 0 : index
    %c0_0 = arith.constant 0 : index
    %c0_1 = arith.constant 0 : index
    %0 = vector.load %arg2[%c0, %c0_0, %c0_1] : memref<1x16x128xbf16, #tpu.memory_space<vmem>>, vector<1x16x128xbf16>
    %1 = vector.shape_cast %0 : vector<1x16x128xbf16> to vector<16x128xbf16>
    %2 = arith.extf %1 : vector<16x128xbf16> to vector<16x128xf32>
    %c0_i32 = arith.constant 0 : i32
    %3 = arith.cmpi eq, %arg1, %c0_i32 : i32
    %4 = arith.extui %3 : i1 to i32
    %c0_i32_2 = arith.constant 0 : i32
    %5 = arith.cmpi ne, %4, %c0_i32_2 : i32
    scf.if %5 {
      %cst_26 = arith.constant 0.000000e+00 : f32
      %46 = vector.broadcast %cst_26 : f32 to vector<4x128xf32>
      %c0_27 = arith.constant 0 : index
      %c0_28 = arith.constant 0 : index
      %47 = vector.load %arg8[%c0_27, %c0_28] : memref<4x128xf32, #tpu.memory_space<vmem>>, vector<4x128xf32>
      tpu.vector_store %arg8[%c0_27, %c0_28], %46 {strides = array<i32>} : memref<4x128xf32, #tpu.memory_space<vmem>>, vector<4x128xf32>,
      %cst_29 = arith.constant 0.000000e+00 : f32
      %48 = vector.broadcast %cst_29 : f32 to vector<4x128xf32>
      %c0_30 = arith.constant 0 : index
      %c0_31 = arith.constant 0 : index
      %49 = vector.load %arg9[%c0_30, %c0_31] : memref<4x128xf32, #tpu.memory_space<vmem>>, vector<4x128xf32>
      tpu.vector_store %arg9[%c0_30, %c0_31], %48 {strides = array<i32>} : memref<4x128xf32, #tpu.memory_space<vmem>>, vector<4x128xf32>,
    } else {
    }
    %c0_3 = arith.constant 0 : index
    %c0_4 = arith.constant 0 : index
    %6 = vector.load %arg8[%c0_3, %c0_4] : memref<4x128xf32, #tpu.memory_space<vmem>>, vector<4x128xf32>
    %7 = tpu.concatenate %6, %2 in 0 : vector<4x128xf32>, vector<16x128xf32> -> vector<20x128xf32>
    %8 = vector.extract_strided_slice %7 {offsets = [0, 0], sizes = [16, 128], strides = [1, 1]} : vector<20x128xf32> to vector<16x128xf32>
    %9 = vector.extract_strided_slice %7 {offsets = [2, 0], sizes = [16, 128], strides = [1, 1]} : vector<20x128xf32> to vector<16x128xf32>
    %10 = vector.extract_strided_slice %7 {offsets = [4, 0], sizes = [16, 128], strides = [1, 1]} : vector<20x128xf32> to vector<16x128xf32>
    %11 = tpu.concatenate %8, %9, %10 in 1 : vector<16x128xf32>, vector<16x128xf32>, vector<16x128xf32> -> vector<16x384xf32>
    %12 = arith.truncf %11 : vector<16x384xf32> to vector<16x384xbf16>
    %c0_5 = arith.constant 0 : index
    %c0_6 = arith.constant 0 : index
    %13 = vector.load %arg3[%c0_5, %c0_6] : memref<384x256xbf16, #tpu.memory_space<vmem>>, vector<384x256xbf16>
    %cst = arith.constant dense<0.000000e+00> : vector<16x256xf32>
    %14 = tpu.matmul %12, %13, %cst {dimension_numbers = #tpu.dot_dimension_numbers<[1], [0], [0], [1], [0, 0, 1, 1], [], []>} : vector<16x384xbf16>, vector<384x256xbf16>, vector<16x256xf32> -> vector<16x256xf32>
    %c0_7 = arith.constant 0 : index
    %c0_8 = arith.constant 0 : index
    %15 = vector.load %arg4[%c0_7, %c0_8] : memref<1x256xf32, #tpu.memory_space<vmem>>, vector<1x256xf32>
    %16 = vector.broadcast %15 : vector<1x256xf32> to vector<16x256xf32>
    %17 = arith.addf %14, %16 : vector<16x256xf32>
    %18 = vector.extract_strided_slice %17 {offsets = [0, 0], sizes = [16, 128], strides = [1, 1]} : vector<16x256xf32> to vector<16x128xf32>
    %cst_9 = arith.constant 0.000000e+00 : f32
    %19 = vector.broadcast %cst_9 : f32 to vector<16x128xf32>
    %20 = arith.maximumf %18, %19 : vector<16x128xf32>
    %21 = vector.extract_strided_slice %17 {offsets = [0, 128], sizes = [16, 128], strides = [1, 1]} : vector<16x256xf32> to vector<16x128xf32>
    %c0_10 = arith.constant 0 : index
    %c0_11 = arith.constant 0 : index
    %22 = vector.load %arg9[%c0_10, %c0_11] : memref<4x128xf32, #tpu.memory_space<vmem>>, vector<4x128xf32>
    %23 = tpu.concatenate %22, %20 in 0 : vector<4x128xf32>, vector<16x128xf32> -> vector<20x128xf32>
    %24 = vector.extract_strided_slice %23 {offsets = [0, 0], sizes = [16, 128], strides = [1, 1]} : vector<20x128xf32> to vector<16x128xf32>
    %25 = vector.extract_strided_slice %23 {offsets = [2, 0], sizes = [16, 128], strides = [1, 1]} : vector<20x128xf32> to vector<16x128xf32>
    %26 = vector.extract_strided_slice %23 {offsets = [4, 0], sizes = [16, 128], strides = [1, 1]} : vector<20x128xf32> to vector<16x128xf32>
    %27 = tpu.concatenate %24, %25, %26 in 1 : vector<16x128xf32>, vector<16x128xf32>, vector<16x128xf32> -> vector<16x384xf32>
    %28 = arith.truncf %27 : vector<16x384xf32> to vector<16x384xbf16>
    %c0_12 = arith.constant 0 : index
    %c0_13 = arith.constant 0 : index
    %29 = vector.load %arg5[%c0_12, %c0_13] : memref<384x128xbf16, #tpu.memory_space<vmem>>, vector<384x128xbf16>
    %cst_14 = arith.constant dense<0.000000e+00> : vector<16x128xf32>
    %30 = tpu.matmul %28, %29, %cst_14 {dimension_numbers = #tpu.dot_dimension_numbers<[1], [0], [0], [1], [0, 0, 1, 1], [], []>} : vector<16x384xbf16>, vector<384x128xbf16>, vector<16x128xf32> -> vector<16x128xf32>
    %c0_15 = arith.constant 0 : index
    %c0_16 = arith.constant 0 : index
    %31 = vector.load %arg6[%c0_15, %c0_16] : memref<1x128xf32, #tpu.memory_space<vmem>>, vector<1x128xf32>
    %32 = vector.broadcast %31 : vector<1x128xf32> to vector<16x128xf32>
    %33 = arith.addf %30, %32 : vector<16x128xf32>
    %cst_17 = arith.constant 0.000000e+00 : f32
    %34 = vector.broadcast %cst_17 : f32 to vector<16x128xf32>
    %35 = arith.maximumf %33, %34 : vector<16x128xf32>
    %36 = arith.addf %35, %21 : vector<16x128xf32>
    %cst_18 = arith.constant 0.000000e+00 : f32
    %37 = vector.broadcast %cst_18 : f32 to vector<16x128xf32>
    %38 = arith.maximumf %36, %37 : vector<16x128xf32>
    %c0_19 = arith.constant 0 : index
    %c0_20 = arith.constant 0 : index
    %c0_21 = arith.constant 0 : index
    %39 = vector.load %arg7[%c0_19, %c0_20, %c0_21] : memref<1x16x128xf32, #tpu.memory_space<vmem>>, vector<1x16x128xf32>
    %40 = vector.shape_cast %39 : vector<1x16x128xf32> to vector<16x128xf32>
    %41 = vector.shape_cast %38 : vector<16x128xf32> to vector<1x16x128xf32>
    tpu.vector_store %arg7[%c0_19, %c0_20, %c0_21], %41 {strides = array<i32>} : memref<1x16x128xf32, #tpu.memory_space<vmem>>, vector<1x16x128xf32>,
    %42 = vector.extract_strided_slice %2 {offsets = [12, 0], sizes = [4, 128], strides = [1, 1]} : vector<16x128xf32> to vector<4x128xf32>
    %c0_22 = arith.constant 0 : index
    %c0_23 = arith.constant 0 : index
    %43 = vector.load %arg8[%c0_22, %c0_23] : memref<4x128xf32, #tpu.memory_space<vmem>>, vector<4x128xf32>
    tpu.vector_store %arg8[%c0_22, %c0_23], %42 {strides = array<i32>} : memref<4x128xf32, #tpu.memory_space<vmem>>, vector<4x128xf32>,
    %44 = vector.extract_strided_slice %20 {offsets = [12, 0], sizes = [4, 128], strides = [1, 1]} : vector<16x128xf32> to vector<4x128xf32>
    %c0_24 = arith.constant 0 : index
    %c0_25 = arith.constant 0 : index
    %45 = vector.load %arg9[%c0_24, %c0_25] : memref<4x128xf32, #tpu.memory_space<vmem>>, vector<4x128xf32>
    tpu.vector_store %arg9[%c0_24, %c0_25], %44 {strides = array<i32>} : memref<4x128xf32, #tpu.memory_space<vmem>>, vector<4x128xf32>,
    return
  }
  func.func @transform_0(%arg0: i32, %arg1: i32) -> (i32, i32, i32) {
    %c0_i32 = arith.constant 0 : i32
    %c0_i32_0 = arith.constant 0 : i32
    return %arg0, %arg1, %c0_i32 : i32, i32, i32
  }
  func.func @transform_1(%arg0: i32, %arg1: i32) -> (i32, i32) {
    %c0_i32 = arith.constant 0 : i32
    %c0_i32_0 = arith.constant 0 : i32
    %c0_i32_1 = arith.constant 0 : i32
    return %c0_i32, %c0_i32_0 : i32, i32
  }
  func.func @transform_2(%arg0: i32, %arg1: i32) -> (i32, i32) {
    %c0_i32 = arith.constant 0 : i32
    %c0_i32_0 = arith.constant 0 : i32
    %c0_i32_1 = arith.constant 0 : i32
    return %c0_i32, %c0_i32_0 : i32, i32
  }
  func.func @transform_3(%arg0: i32, %arg1: i32) -> (i32, i32) {
    %c0_i32 = arith.constant 0 : i32
    %c0_i32_0 = arith.constant 0 : i32
    %c0_i32_1 = arith.constant 0 : i32
    return %c0_i32, %c0_i32_0 : i32, i32
  }
  func.func @transform_4(%arg0: i32, %arg1: i32) -> (i32, i32) {
    %c0_i32 = arith.constant 0 : i32
    %c0_i32_0 = arith.constant 0 : i32
    %c0_i32_1 = arith.constant 0 : i32
    return %c0_i32, %c0_i32_0 : i32, i32
  }
  func.func @transform_5(%arg0: i32, %arg1: i32) -> (i32, i32, i32) {
    %c0_i32 = arith.constant 0 : i32
    %c0_i32_0 = arith.constant 0 : i32
    return %arg0, %arg1, %c0_i32 : i32, i32, i32
  }
}

</mosaic_0001>

<bundles_post_ra>
// kernel: tpu_custom_call.1
= control target key start
LH: loop header
LB: loop body
LE: loop exit
PB: predicated region body
PF: predicated region fallthrough
CT: control target
= control target key end

     0   :  { %s2008_s0 = inlined_call_operand.hbm [shape: bf16[2,64,128], index: 0, kind: input, shape index: {}]   ;;  %s2009_s1 = inlined_call_operand.hbm [shape: bf16[384,256], index: 1, kind: input, shape index: {}]   ;;  %s2010_s2 = inlined_call_operand.vmem [shape: f32[1,256], index: 2, kind: input, shape index: {}]   ;;  %s2011_s3 = inlined_call_operand.hbm [shape: bf16[384,128], index: 3, kind: input, shape index: {}]   ;;  %s2012_s4 = inlined_call_operand.vmem [shape: f32[1,128], index: 4, kind: input, shape index: {}]   ;;  %s2013_s5 = inlined_call_operand.hbm [shape: f32[2,64,128], index: 5, kind: output, shape index: {}]  }
   0x1   :  { %2025 = sst [smem:[#allocation18_spill]] %s2009_s1 }
   0x2   :  { %2026 = sst [smem:[#allocation19_spill]] %s2011_s3 }
   0x3   :  { %2027 = sst [smem:[#allocation20_spill]] %s2012_s4 }
   0x4   :  { %2028 = sst [smem:[#allocation21_spill]] %s2013_s5 }
   0x5   :  { %10 = vsyncpa [#allocation5], 0 }
   0x6   :  { %12 = vsyncpa [#allocation5 + $0x1], 0 }
   0x7   :  { %13 = vsyncpa [#allocation8], 0 }
   0x8   :  { %14 = vsyncpa [#allocation6], 0 }
   0x9   :  { %16 = vsyncpa [#allocation6 + $0x1], 0  ;;  %s1744_s18 = smov 0   ;;  %s1746_s19 = smov 0  }
   0xa   :  { %s1748_s20 = smov 0   ;;  %s1750_s21 = smov 0  }
   0xb   :  { %s1752_s22 = smov 0   ;;  %s1754_s23 = smov 0  }
   0xc   :  { %s1756_s24 = smov 0   ;;  %s1758_s25 = smov 0  }
   0xd LB: > { %2029 = sst [smem:[#allocation14_spill]] %s1670_s18  ;;  %s1163_s26 = sadd.s32 4294967295, %s1698_s25   ;;  %s1698_s25 = sphi %s1758_s25, %s22_s25   ;;  %s1694_s24 = sphi %s1756_s24, %s2062_s24   ;;  %s1690_s23 = sphi %s1754_s23, %s2061_s23   ;;  %s1686_s22 = sphi %s1752_s22, %s2060_s22   ;;  %s1682_s21 = sphi %s1750_s21, %s2059_s21   ;;  %s1678_s20 = sphi %s1748_s20, %s2058_s20   ;;  %s1674_s19 = sphi %s1746_s19, %s2057_s19   ;;  %s1670_s18 = sphi %s1744_s18, %s2056_s18  }
   0xe   : > { %s1164_s27 = sadd.s32 4294967294, %s1698_s25   ;;  %p56_p0 = scmp.ne.s32.totalorder %s1674_s19, %s1670_s18 }
   0xf   : > { %p1788_p1 = scmp.eq.s32.totalorder %s1163_s26, 0  ;;  %p1792_p2 = scmp.eq.s32.totalorder %s1163_s26, 7 }
  0x10   : > { %p172_p3 = scmp.eq.s32.totalorder %s1164_s27, 7  ;;  %p1165_p5 = scmp.ge.s32.totalorder %s1698_s25, 1 }
  0x11   : > { %s2030_s28 = scalar_select %p1788_p1, 1, 0 }
  0x12   : > { %p1798_p4 = por %p1788_p1, %p56_p0  ;;  %p1803_p6 = por %p172_p3, %p56_p0 }
  0x13   : > { %p179_p7 = scmp.lt.s32.totalorder %s1698_s25, 9  ;;  %s1700_s8 = smov [#allocation7]  }
  0x14   : > { %s2032_s30 = scalar_select %p1798_p4, 1, 0 }
  0x15   : > { %s2033_s6 = scalar_select %p1803_p6, 1, 0 }
  0x16   : > { %p1808_p8 = pnand %p1165_p5, %p179_p7  ;;  %s191_s9 = sshll.u32 %s1700_s8, 4  ;;  %s192_s9 = int_to_ptr.vmem [resolvable:$true] %s191_s9 }
  0x17   : > { %2034 = sst [smem:[#allocation15_spill]] %s2033_s6  ;;  %s1701_s11 = smov [#allocation9]  }
  0x18   : > { %p1325_p9 = pneg %p1808_p8  ;;  %s207_s12 = sshll.u32 %s1701_s11, 4  ;;  %s208_s12 = int_to_ptr.vmem [resolvable:$true] %s207_s12 }
  0x19   : > { %s1529_s13 = scalar_lea.vmem %s192_s9, 6144  ;;  %p1537_p3 = scmp.lt.s32.totalorder %s192_s9, %s192_s9 }
  0x1a   : > { %p1816_p10 = pnand %p1325_p9, %p1788_p1  ;;  %p1530_p12 = scmp.ne.s32.totalorder %s192_s9, %s1529_s13 }
  0x1b   : > { %p1538_p5 = scmp.lt.s32.totalorder %s1529_s13, %s1529_s13 }
  0x1c   : > { %p1520_p11 = pneg %p1816_p10 }
  0x1d   : > { %p1539_p7 = por %p1538_p5, %p1537_p3 }
  0x1e   : > { %p1532_p13 = pnand %p1530_p12, %p1520_p11 }
  0x20   : > { %p1533_p0 = pneg %p1532_p13 }
  0x22   : > { %p1540_p9 = pnand %p1539_p7, %p1533_p0 }
  0x24   : > { %1543 = shalt.err (!%p1540_p9)
}
  0x25   : > { %s1702_s14 = smov 128   ;;  %s1703_s15 = smov 8  }
  0x26   : > { %s2037_s1 = sld [smem:[#allocation18_spill]]  ;;  %s1555_s26 = scalar_lea.vmem %s208_s12, 3072 }
  0x27   : > { %p1556_p6 = scmp.ne.s32.totalorder %s208_s12, %s1555_s26  ;;  %p1563_p1 = scmp.lt.s32.totalorder %s208_s12, %s208_s12 }
  0x28   : > { %p1564_p4 = scmp.lt.s32.totalorder %s1555_s26, %s1555_s26 }
  0x29   : > { %p1558_p12 = pnand %p1556_p6, %p1520_p11 }
  0x2a   : > { %p1565_p3 = por %p1564_p4, %p1563_p1 }
  0x2b   : > { %p1559_p13 = pneg %p1558_p12 }
  0x2c   : > { %1328 = dma.hbm_to_vmem [thread:$0]  (!%p1816_p10), %s2037_s1, 6144, %s192_s9, [#allocation8], %s1702_s14, %s1702_s14, %s1703_s15  }
  0x2d   : > { %p1566_p0 = pnand %p1565_p3, %p1559_p13 }
  0x2f   : > { %1569 = shalt.err (!%p1566_p0)
}
  0x30   : > { %s2017_s27 = smov 64   ;;  %s2018_s8 = smov 4  }
  0x31   : > { %s2038_s3 = sld [smem:[#allocation19_spill]]  ;;  %s31_s13 = sadd.s32 1, %s1690_s23 }
  0x32   : > { %s34_s14 = sadd.s32 1, %s1694_s24  ;;  %p32_p1 = scmp.ge.s32.totalorder %s31_s13, 4 }
  0x33   : > { %s43_s15 = sadd.s32 1, %s1678_s20  ;;  %p50_p4 = scmp.ne.s32.totalorder %s1678_s20, %s1674_s19 }
  0x34   : > { %p51_p6 = scmp.eq.s32.totalorder %s1698_s25, 0  ;;  %s2064_s13 = smov (%p32_p1, %s31_s13), 0 }
  0x35   : > { %2039 = sst [smem:[#allocation16_spill]] %s2064_s13  ;;  %s2066_s14 = smov (!%p32_p1, %s34_s14), %s1694_s24 }
  0x36   : > { %s39_s10 = ssub.s32 %s1690_s23, %s2064_s13  ;;  %p1852_p11 = por %p51_p6, %p50_p4 }
  0x37   : > { %1331 = dma.hbm_to_vmem [thread:$0]  (!%p1816_p10), %s2038_s3, 3072, %s208_s12, [#allocation8], %s2017_s27, %s2017_s27, %s2018_s8  }
  0x38   : > { %p36_p10 = scmp.ge.s32.totalorder %s2066_s14, 2  ;;  %p1858_p5 = por %p1792_p2, %p50_p4 }
  0x39   : > { %p1342_p7 = scmp.lt.s32.totalorder %s1698_s25, 8  ;;  %s224_s17 = sand.u32 1, %s1678_s20  }
  0x3a   : > { %s2041_s12 = scalar_select %p1858_p5, 1, 0 }
  0x3b   : > { %s2068_s14 = smov (%p36_p10, %s2066_s14), 0  ;;  %s1169_s26 = sshll.u32 %s224_s17, 3 }
  0x3c   : > { %2042 = sst [smem:[#allocation17_spill]] %s2041_s12  ;;  %s38_s9 = ssub.s32 %s1694_s24, %s2068_s14 }
  0x3d   : > { %s40_s11 = sor.u32 %s39_s10, %s38_s9  ;;  %s1170_s27 = sshll.u32 %s1690_s23, 1 }
  0x3e   : > { %p41_p9 = scmp.eq.s32.totalorder %s40_s11, 0  ;;  %s1171_s8 = sshll.u32 %s1694_s24, 3 }
  0x3f   : > { %s234_s1 = sadd.s32 %s1171_s8, %s1170_s27  ;;  %s228_s3 = scalar_lea.vmem [#allocation4], %s1169_s26 }
  0x40   : > { %s237_s29 = sshll.u32 %s228_s3, 4  ;;  %s1172_s6 = sshll.u32 %s234_s1, 6  ;;  %s238_s29 = int_to_ptr.vmem [resolvable:$true] %s237_s29 }
  0x41   : > { %s1871_s13 = scalar_select %p41_p9, %s1678_s20, %s43_s15  }
  0x42   : > { %s236_s12 = scalar_lea.hbm %s2008_s0, %s1172_s6  ;;  %p1880_p2 = pnand %p1342_p7, %p1852_p11 }
  0x43   : > { %s225_s10 = scalar_lea.sflag [#allocation5], %s224_s17  ;;  %s1583_s27 = scalar_lea.vmem %s238_s29, 128 }
  0x44   : > { %p1572_p12 = pneg %p1880_p2  ;;  %p1584_p13 = scmp.ne.s32.totalorder %s238_s29, %s1583_s27 }
  0x45   : > { %s1706_s1 = smov [#allocation4]  }
  0x46   : > { %p1586_p3 = pnand %p1584_p13, %p1572_p12  ;;  %s1588_s3 = sshll.u32 %s1706_s1, 4  ;;  %s1589_s3 = int_to_ptr.vmem [resolvable:$false] %s1588_s3 }
  0x47   : > { %s1590_s8 = scalar_lea.vmem %s1589_s3, 256  ;;  %p1591_p1 = scmp.lt.s32.totalorder %s238_s29, %s1589_s3 }
  0x48   : > { %p1587_p0 = pneg %p1586_p3  ;;  %p1592_p4 = scmp.lt.s32.totalorder %s1590_s8, %s1583_s27 }
  0x4a   : > { %p1593_p6 = por %p1592_p4, %p1591_p1 }
  0x4c   : > { %p1594_p10 = pnand %p1593_p6, %p1587_p0 }
  0x4e   : > { %1597 = shalt.err (!%p1594_p10)
}
  0x4f   : > { %s2044_s5 = smov 4   ;;  %s2045_s18 = smov 64  }
  0x50   : > { %1335 = dma.hbm_to_vmem [thread:$0]  (!%p1880_p2), %s236_s12, 128, %s238_s29, %s225_s10, %s2045_s18, %s2045_s18, %s2044_s5  }
  0x51   : > { %249 = sbr.rel (%p1808_p8) target bundleno = 601 (0x259), region = 40  ;;  %s1894_s6 = sand.u32 (!%p1808_p8), 1, %s1674_s19  }
  0x52   : > { %s1174_s15 = sshll.u32 (!%p1808_p8), %s1894_s6, 3  ;;  %s252_s16 = scalar_lea.sflag (!%p1808_p8), [#allocation5], %s1894_s6 }
  0x53   : > { %s255_s17 = scalar_lea.vmem (!%p1808_p8), [#allocation4], %s1174_s15  ;;  %p2046_p11 = scmp.ne.s32.totalorder (!%p1808_p8), %s2032_s30, 0 }
  0x56   : > { %1657 = dma.done.wait (%p2046_p11), %s252_s16, 128  }
  0x57   : > { %1659 = vsyncadd (%p2046_p11), %s252_s16, 4294967168  ;;  %p2047_p7 = scmp.ne.s32.totalorder %s2030_s28, 0 }
  0x59   : > { %1661 = dma.done.wait (%p2047_p7), [#allocation8], 9216  }
  0x5a   : > { %1663 = vsyncadd (%p2047_p7), [#allocation8], 4294958080  ;;  %s1177_s4 = sshll.u32 %s1894_s6, 4  ;;  %v1907_v0 = vld [vmem:[%s255_s17] sm:$0xff]   ;;  %p1178_p8 = scmp.ne.s32.totalorder %s1682_s21, 0 }
  0x5b   : > { %v1260_v1 = vunpack.c.l.bf16 %v1907_v0  ;;  %v1261_v2 = vunpack.c.h.bf16 %v1907_v0  ;;  %s1911_s7 = scalar_lea.vmem [#allocation10], %s1177_s4 }
  0x5c   : > { %300 = sbr.rel (%p1178_p8) target bundleno = 99 (0x63), region = 56 }
  0x61   : > { %v1707_v3 = vmov 0.0  }
  0x62   : > { %301 = vst [vmem:[#allocation2] sm:$0xf] %v1707_v3  ;;  %302 = vst [vmem:[#allocation3] sm:$0xf] %v1707_v3 }
  0x63 PF: > { %v1422_v4 = vld [vmem:[#allocation7 + $0x74] ss:$8 sps:$4 sm:$0xff]   ;;  %v1424_v5 = vld [vmem:[#allocation7 + $0x70] ss:$8 sps:$4 sm:$0xff]   ;;  %v1708_v6 = vmov 0   ;;  %v307_v29 = vrot.slane %v1260_v1, 4 }
  0x64   : > { %707 = vmatprep.mubr.bf16.mxu1 %v1708_v6  ;;  %632 = vmatprep.subr.bf16.mxu0 %v1422_v4  ;;  %v1425_v7 = vld [vmem:[#allocation7 + $0x64] ss:$8 sps:$4 sm:$0xff]   ;;  %v1427_v8 = vld [vmem:[#allocation7 + $0x60] ss:$8 sps:$4 sm:$0xff]   ;;  %v1428_v9 = vld [vmem:[#allocation7 + $0x54] ss:$8 sps:$4 sm:$0xff]  }
  0x65   : > { %633 = vmatpush1.bf16.msra.mxu0 %v1424_v5  ;;  %v1430_v10 = vld [vmem:[#allocation7 + $0x50] ss:$8 sps:$4 sm:$0xff]   ;;  %v1431_v11 = vld [vmem:[#allocation7 + $0x44] ss:$8 sps:$4 sm:$0xff]   ;;  %v1433_v12 = vld [vmem:[#allocation7 + $0x40] ss:$8 sps:$4 sm:$0xff]  }
  0x66   : > { %634 = vmatprep.subr.bf16.mxu0 %v1425_v7  ;;  %v1445_v13 = vld [vmem:[#allocation7 + $0x174] ss:$8 sps:$4 sm:$0xff]   ;;  %v1448_v14 = vld [vmem:[#allocation7 + $0x170] ss:$8 sps:$4 sm:$0xff]   ;;  %v1451_v16 = vld [vmem:[#allocation7 + $0x164] ss:$8 sps:$4 sm:$0xff]  }
  0x67   : > { %v1434_v15 = vld [vmem:[#allocation7 + $0x34] ss:$8 sps:$4 sm:$0xff]   ;;  %675 = vmatprep.subr.bf16.mxu1 %v1445_v13  ;;  %v1454_v17 = vld [vmem:[#allocation7 + $0x160] ss:$8 sps:$4 sm:$0xff]   ;;  %v1436_v18 = vld [vmem:[#allocation7 + $0x30] ss:$8 sps:$4 sm:$0xff]  }
  0x68   : > { %676 = vmatpush1.bf16.msra.mxu1 %v1448_v14  ;;  %v1437_v19 = vld [vmem:[#allocation7 + $0x24] ss:$8 sps:$4 sm:$0xff]   ;;  %v1457_v20 = vld [vmem:[#allocation7 + $0x154] ss:$8 sps:$4 sm:$0xff]   ;;  %v1460_v21 = vld [vmem:[#allocation7 + $0x150] ss:$8 sps:$4 sm:$0xff]  }
  0x69   : > { %635 = vmatpush1.bf16.msra.mxu0 %v1427_v8  ;;  %677 = vmatprep.subr.bf16.mxu1 %v1451_v16  ;;  %v1439_v22 = vld [vmem:[#allocation7 + $0x20] ss:$8 sps:$4 sm:$0xff]   ;;  %v1463_v23 = vld [vmem:[#allocation7 + $0x144] ss:$8 sps:$4 sm:$0xff]   ;;  %v1440_v24 = vld [vmem:[#allocation7 + $0x14] ss:$8 sps:$4 sm:$0xff]  }
  0x6a   : > { %636 = vmatprep.subr.bf16.mxu0 %v1428_v9  ;;  %v1442_v25 = vld [vmem:[#allocation7 + $0x10] ss:$8 sps:$4 sm:$0xff]   ;;  %v1466_v26 = vld [vmem:[#allocation7 + $0x140] ss:$8 sps:$4 sm:$0xff]   ;;  %v1469_v27 = vld [vmem:[#allocation7 + $0x134] ss:$8 sps:$4 sm:$0xff]  }
  0x6b   : > { %v1443_v28 = vld [vmem:[#allocation7 + $0x4] ss:$8 sps:$4 sm:$0xff]   ;;  %v308_v30 = vrot.slane %v1261_v2, 4  ;;  %vm306_vm0 = vcmask 1043456   ;;  %v1472_v31 = vld [vmem:[#allocation7 + $0x130] ss:$8 sps:$4 sm:$0xff]  }
  0x6c   : > { %678 = vmatpush1.bf16.msra.mxu1 %v1454_v17  ;;  %v1447_v32 = vld [vmem:[#allocation7] ss:$8 sps:$4 sm:$0xff]   ;;  %v1475_v33 = vld [vmem:[#allocation7 + $0x124] ss:$8 sps:$4 sm:$0xff]   ;;  %v1449_v34 = vld [vmem:[#allocation7 + $0xf4] ss:$8 sps:$4 sm:$0xff]   ;;  %v382_v17 = vlaneseq }
  0x6d   : > { %637 = vmatpush1.bf16.msra.mxu0 %v1430_v10  ;;  %679 = vmatprep.subr.bf16.mxu1 %v1457_v20  ;;  %v1917_v35 = vsel %vm306_vm0, %v307_v29, %v308_v30  ;;  %vm314_vm1 = vcmask 1045504   ;;  %v318_v37 = vrot.slane %v308_v30, 2  ;;  %v1453_v38 = vld [vmem:[#allocation7 + $0xf0] ss:$8 sps:$4 sm:$0xff]   ;;  %v1478_v39 = vld [vmem:[#allocation7 + $0x120] ss:$8 sps:$4 sm:$0xff]  }
  0x6e   : > { %638 = vmatprep.subr.bf16.mxu0 %v1431_v11  ;;  %v316_v36 = vrot.slane %v1917_v35, 2  ;;  %v325_v40 = vrot.slane %v308_v30, 4  ;;  %v1481_v41 = vld [vmem:[#allocation7 + $0x114] ss:$8 sps:$4 sm:$0xff]   ;;  %v303_v42 = vld [vmem:[#allocation2] sm:$0xf] }
  0x6f   : > { %v323_v43 = vrot.slane %v1917_v35, 4  ;;  %v1455_v44 = vld [vmem:[#allocation7 + $0xe4] ss:$8 sps:$4 sm:$0xff]   ;;  %v312_v45 = vsel %vm306_vm0, %v303_v42, %v307_v29  ;;  %1036 = vst [vmem:[#allocation2 - $0x4] sm:$0xf0] %v1261_v2  ;;  %v1494_v60 = vld [vmem:[#allocation9 + $0x78] sm:$0xff]  }
  0x70   : > { %680 = vmatpush1.bf16.msra.mxu1 %v1460_v21  ;;  %v1459_v46 = vld [vmem:[#allocation7 + $0xe0] ss:$8 sps:$4 sm:$0xff]   ;;  %v1484_v47 = vld [vmem:[#allocation7 + $0x110] ss:$8 sps:$4 sm:$0xff]   ;;  %v322_v48 = vrot.slane %v312_v45, 4  ;;  %v315_v49 = vrot.slane %v312_v45, 2  ;;  %v319_v50 = vsel %vm314_vm1, %v316_v36, %v318_v37  ;;  %v329_v10 = vpack.c.bf16 %v1917_v35, %v312_v45 }
  0x71   : > { %639 = vmatpush1.bf16.msra.mxu0 %v1433_v12  ;;  %681 = vmatprep.subr.bf16.mxu1 %v1463_v23  ;;  %v1487_v51 = vld [vmem:[#allocation7 + $0x104] ss:$8 sps:$4 sm:$0xff]   ;;  %v1461_v53 = vld [vmem:[#allocation7 + $0xd4] ss:$8 sps:$4 sm:$0xff]   ;;  %v1465_v55 = vld [vmem:[#allocation7 + $0xd0] ss:$8 sps:$4 sm:$0xff]   ;;  %v326_v59 = vsel %vm306_vm0, %v323_v43, %v325_v40 }
  0x72   : > { %640 = vmatprep.subr.bf16.mxu0 %v1434_v15  ;;  %v317_v52 = vsel %vm314_vm1, %v315_v49, %v316_v36  ;;  %v1490_v56 = vld [vmem:[#allocation7 + $0x100] ss:$8 sps:$4 sm:$0xff]   ;;  %v1467_v57 = vld [vmem:[#allocation7 + $0xc4] ss:$8 sps:$4 sm:$0xff]   ;;  %v324_v58 = vsel %vm306_vm0, %v322_v48, %v323_v43  ;;  %v1496_v61 = vld [vmem:[#allocation9 + $0x38] sm:$0xff]   ;;  %v1709_v12 = vmov 0.0  }
  0x73   : > { %v330_v54 = vpack.c.bf16 %v319_v50, %v317_v52  ;;  %v1471_v62 = vld [vmem:[#allocation7 + $0xc0] ss:$8 sps:$4 sm:$0xff]   ;;  %v331_v63 = vpack.c.bf16 %v326_v59, %v324_v58  ;;  %v1497_v0 = vld [vmem:[#allocation9 + $0x70] sm:$0xff]   ;;  %v1479_v4 = vld [vmem:[#allocation7 + $0xa4] ss:$8 sps:$4 sm:$0xff]   ;;  %vm1710_vm2 = vmmov 0  }
  0x74   : > { %682 = vmatpush1.bf16.msra.mxu1 %v1466_v26  ;;  %v1473_v1 = vld [vmem:[#allocation7 + $0xb4] ss:$8 sps:$4 sm:$0xff]   ;;  %v1477_v3 = vld [vmem:[#allocation7 + $0xb0] ss:$8 sps:$4 sm:$0xff]   ;;  %v1483_v5 = vld [vmem:[#allocation7 + $0xa0] ss:$8 sps:$4 sm:$0xff]  }
  0x75   : > { %641 = vmatpush1.bf16.msra.mxu0 %v1436_v18  ;;  %683 = vmatprep.subr.bf16.mxu1 %v1469_v27  ;;  %v1499_v2 = vld [vmem:[#allocation9 + $0x30] sm:$0xff]   ;;  %v1491_v8 = vld [vmem:[#allocation7 + $0x84] ss:$8 sps:$4 sm:$0xff]   ;;  %v1493_v9 = vld [vmem:[#allocation7 + $0x80] ss:$8 sps:$4 sm:$0xff]   ;;  %v383_v18 = vshrl.u32 %v382_v17, 7 }
  0x76   : > { %642 = vmatprep.subr.bf16.mxu0 %v1437_v19  ;;  %664 = vmatprep.mubr.bf16.mxu0 %v330_v54  ;;  %v1485_v6 = vld [vmem:[#allocation7 + $0x94] ss:$8 sps:$4 sm:$0xff]   ;;  %v1489_v7 = vld [vmem:[#allocation7 + $0x90] ss:$8 sps:$4 sm:$0xff]   ;;  %v1500_v14 = vld [vmem:[#allocation9 + $0x68] sm:$0xff]   ;;  %s2048_s9 = sld [smem:[#allocation20_spill]] }
  0x77   : > { %v1495_v11 = vld [vmem:[#allocation9 + $0xb8] sm:$0xff]   ;;  %v1498_v13 = vld [vmem:[#allocation9 + $0xb0] sm:$0xff]   ;;  %v1501_v15 = vld [vmem:[#allocation9 + $0xa8] sm:$0xff]   ;;  %v384_v37 = vsub.s32 0, %v383_v18  ;;  %s1253_s11 = sshll.u32 %s1682_s21, 1  ;;  %s1254_s29 = sshll.u32 %s1686_s22, 3 }
  0x78   : > { %684 = vmatpush1.bf16.msra.mxu1 %v1472_v31  ;;  %v1502_v16 = vld [vmem:[#allocation9 + $0x28] sm:$0xff]   ;;  %v1503_v19 = vld [vmem:[#allocation9 + $0x60] sm:$0xff]   ;;  %v1507_v26 = vld [vmem:[#allocation9 + $0x98] sm:$0xff]   ;;  %s1051_s10 = sadd.s32 %s1254_s29, %s1253_s11  ;;  %s1054_s3 = sshll.u32 %s1911_s7, 4  ;;  %s1954_s3 = int_to_ptr.vmem [resolvable:$true] %s1054_s3 }
  0x79   : > { %643 = vmatpush1.bf16.msra.mxu0 %v1439_v22  ;;  %685 = vmatprep.subr.bf16.mxu1 %v1475_v33  ;;  %v1504_v20 = vld [vmem:[#allocation9 + $0xa0] sm:$0xff]   ;;  %v388_v22 = vsub.s32 1, %v383_v18  ;;  %v380_v23 = vld [vmem:[%s2010_s2] sm:$0x3]  ;;  %v1508_v27 = vld [vmem:[#allocation9 + $0x18] sm:$0xff]   ;;  %s1255_s1 = sshll.u32 %s1051_s10, 7 }
  0x7a   : > { %644 = vmatprep.subr.bf16.mxu0 %v1440_v24  ;;  %v1505_v21 = vld [vmem:[#allocation9 + $0x20] sm:$0xff]   ;;  %v1510_v29 = vld [vmem:[#allocation9 + $0x90] sm:$0xff]   ;;  %v1512_v31 = vld [vmem:[#allocation9 + $0x48] sm:$0xff]   ;;  %s2050_s22 = sld [smem:[#allocation21_spill]]  ;;  %s1039_s15 = scalar_lea.sflag [#allocation6], %s1894_s6 }
  0x7b   : > { %v1932_v24 = vrot.slane %v380_v23, %v388_v22  ;;  %v1511_v30 = vld [vmem:[#allocation9 + $0x10] sm:$0xff]   ;;  %v1514_v33 = vld [vmem:[#allocation9 + $0x8] sm:$0xff]   ;;  %v1516_v35 = vld [vmem:[#allocation9 + $0x80] sm:$0xff]   ;;  %s1598_s16 = scalar_lea.vmem %s1954_s3, 256  ;;  %s1711_s17 = smov [#allocation10]  }
  0x7c   : > { %686 = vmatpush1.bf16.msra.mxu1 %v1478_v39  ;;  %v1517_v36 = vld [vmem:[#allocation9] sm:$0xff]   ;;  %p1599_p9 = scmp.ne.s32.totalorder %s1954_s3, %s1598_s16  ;;  %s1602_s4 = sshll.u32 %s1711_s17, 4  ;;  %s1603_s4 = int_to_ptr.vmem [resolvable:$false] %s1602_s4 }
  0x7d   : > { %645 = vmatpush1.bf16.msra.mxu0 %v1442_v25  ;;  %687 = vmatprep.subr.bf16.mxu1 %v1481_v41  ;;  %v1506_v25 = vld [vmem:[#allocation9 + $0x58] sm:$0xff]   ;;  %s1604_s28 = scalar_lea.vmem %s1603_s4, 512  ;;  %p1605_p13 = scmp.lt.s32.totalorder %s1954_s3, %s1603_s4 }
  0x7e   : > { %646 = vmatprep.subr.bf16.mxu0 %v1443_v28  ;;  %v1509_v28 = vld [vmem:[#allocation9 + $0x50] sm:$0xff]   ;;  %p1600_p2 = pnand %p1599_p9, %p1858_p5  ;;  %p1606_p3 = scmp.lt.s32.totalorder %s1604_s28, %s1598_s16 }
  0x80   : > { %688 = vmatpush1.bf16.msra.mxu1 %v1484_v47  ;;  %s2051_s5 = smov %s2050_s22  ;;  %s1952_s18 = scalar_lea.hbm %s2050_s22, %s1255_s1 }
  0x81   : > { %647 = vmatpush1.bf16.msra.mxu0 %v1447_v32  ;;  %689 = vmatprep.subr.bf16.mxu1 %v1487_v51  ;;  %v1513_v32 = vld [vmem:[#allocation9 + $0x88] sm:$0xff]   ;;  %p1601_p12 = pneg %p1600_p2  ;;  %p1607_p0 = por %p1606_p3, %p1605_p13 }
  0x82   : > { %648 = vmatprep.subr.bf16.mxu0 %v1449_v34  ;;  %v1515_v34 = vld [vmem:[#allocation9 + $0x40] sm:$0xff]  }
  0x83   : > { %p1608_p1 = pnand %p1607_p0, %p1601_p12 }
  0x84   : > { %690 = vmatpush1.bf16.msra.mxu1 %v1490_v56 }
  0x85   : > { %649 = vmatpush2.bf16.msra.mxu0 %v1453_v38  ;;  %1262 = vmatprep.subr.bf16.mxu1 %v1494_v60  ;;  %v385_v38 = vrot.slane %v380_v23, %v384_v37 }
  0x86   : > { %650 = vmatprep.subr.bf16.mxu0 %v1455_v44 }
  0x87   : > { %708 = vmatmul.mubr.bf16.vlgmr.msra.gmra.mxu1 %v331_v63 }
  0x88   : > { %1263 = vmatpush3.bf16.msra.mxu1 %v1496_v61 }
  0x89   : > { %651 = vmatpush2.bf16.msra.mxu0 %v1459_v46  ;;  %1264 = vmatprep.subr.bf16.mxu1 %v1497_v0 }
  0x8a   : > { %652 = vmatprep.subr.bf16.mxu0 %v1461_v53  ;;  %v720_v53 = vld [vmem:[#allocation3] sm:$0xf] }
  0x8c   : > { %1265 = vmatpush3.bf16.msra.mxu1 %v1499_v2 }
  0x8d   : > { %653 = vmatpush2.bf16.msra.mxu0 %v1465_v55  ;;  %1266 = vmatprep.subr.bf16.mxu1 %v1500_v14 }
  0x8e   : > { %654 = vmatprep.subr.bf16.mxu0 %v1467_v57 }
  0x90   : > { %1267 = vmatpush3.bf16.msra.mxu1 %v1502_v16 }
  0x91   : > { %655 = vmatpush2.bf16.msra.mxu0 %v1471_v62  ;;  %1268 = vmatprep.subr.bf16.mxu1 %v1503_v19 }
  0x92   : > { %656 = vmatprep.subr.bf16.mxu0 %v1473_v1 }
  0x94   : > { %1269 = vmatpush3.bf16.msra.mxu1 %v1505_v21 }
  0x95   : > { %657 = vmatpush2.bf16.msra.mxu0 %v1477_v3  ;;  %1270 = vmatprep.subr.bf16.mxu1 %v1506_v25 }
  0x96   : > { %658 = vmatprep.subr.bf16.mxu0 %v1479_v4 }
  0x98   : > { %1271 = vmatpush3.bf16.msra.mxu1 %v1508_v27 }
  0x99   : > { %659 = vmatpush2.bf16.msra.mxu0 %v1483_v5  ;;  %1272 = vmatprep.subr.bf16.mxu1 %v1509_v28 }
  0x9a   : > { %660 = vmatprep.subr.bf16.mxu0 %v1485_v6 }
  0x9c   : > { %1273 = vmatpush3.bf16.msra.mxu1 %v1511_v30 }
  0x9d   : > { %661 = vmatpush2.bf16.msra.mxu0 %v1489_v7  ;;  %1274 = vmatprep.subr.bf16.mxu1 %v1512_v31 }
  0x9e   : > { %662 = vmatprep.subr.bf16.mxu0 %v1491_v8 }
  0xa0   : > { %1275 = vmatpush3.bf16.msra.mxu1 %v1514_v33 }
  0xa1   : > { %663 = vmatpush2.bf16.msra.mxu0 %v1493_v9  ;;  %1276 = vmatprep.subr.bf16.mxu1 %v1515_v34 }
  0xa2   : > { %1293 = vmatprep.subr.bf16.mxu0 %v1709_v12 }
  0xa4   : > { %665 = vmatmul.mubr.bf16.vlgmr.msra.gmra.mxu0 %v329_v10  ;;  %1277 = vmatpush3.bf16.msra.mxu1 %v1517_v36 }
  0xa5   : > { %1294 = vmatpush3.bf16.msra.mxu0 %v1495_v11  ;;  %1309 = vmatprep.mubr.msk.bf16.mxu0 %vm1710_vm2, %v1709_v12 }
  0xa6   : > { %1295 = vmatprep.subr.bf16.mxu0 %v1709_v12 }
  0xa9   : > { %1296 = vmatpush3.bf16.msra.mxu0 %v1498_v13 }
  0xaa   : > { %1297 = vmatprep.subr.bf16.mxu0 %v1709_v12 }
  0xad   : > { %1298 = vmatpush3.bf16.msra.mxu0 %v1501_v15 }
  0xae   : > { %1299 = vmatprep.subr.bf16.mxu0 %v1709_v12 }
  0xb1   : > { %1300 = vmatpush3.bf16.msra.mxu0 %v1504_v20 }
  0xb2   : > { %1301 = vmatprep.subr.bf16.mxu0 %v1709_v12 }
  0xb5   : > { %1302 = vmatpush3.bf16.msra.mxu0 %v1507_v26 }
  0xb6   : > { %1303 = vmatprep.subr.bf16.mxu0 %v1709_v12 }
  0xb9   : > { %1304 = vmatpush3.bf16.msra.mxu0 %v1510_v29 }
  0xba   : > { %1305 = vmatprep.subr.bf16.mxu0 %v1709_v12 }
  0xbd   : > { %1306 = vmatpush3.bf16.msra.mxu0 %v1513_v32 }
  0xbe   : > { %1307 = vmatprep.subr.bf16.mxu0 %v1709_v12  ;;  %v1227_v12 = vld [vmem:[%s2048_s9] ss:$0 sm:$0xff] }
  0xc1   : > { %1308 = vmatpush3.bf16.msra.mxu0 %v1516_v35 }
 0x147   : > { %v709_v39 = vpop.f32.mrf.mxu1 }
 0x149   : > { %v711_v42 = vpop.f32.mrf.mxu1 }
 0x14b   : > { %v713_v50 = vpop.f32.mrf.mxu1 }
 0x14d   : > { %v715_v8 = vpop.f32.mrf.mxu1 }
 0x164   : > { %v666_v40 = vpop.f32.mrf.mxu0 }
 0x165   : > { %v667_v41 = vadd.f32 %v666_v40, %v385_v38 }
 0x166   : > { %v668_v43 = vpop.f32.mrf.mxu0 }
 0x167   : > { %v710_v44 = vadd.f32 %v709_v39, %v667_v41  ;;  %v669_v45 = vadd.f32 %v668_v43, %v1932_v24 }
 0x168   : > { %v670_v46 = vpop.f32.mrf.mxu0 }
 0x169   : > { %v718_v47 = vmax.f32 %v710_v44, 0.0  ;;  %v712_v48 = vadd.f32 %v711_v42, %v669_v45  ;;  %v671_v49 = vadd.f32 %v670_v46, %v385_v38 }
 0x16a   : > { %v672_v7 = vpop.f32.mrf.mxu0 }
 0x16b   : > { %v723_v51 = vrot.slane %v718_v47, 4  ;;  %v714_v52 = vadd.f32 %v713_v50, %v671_v49  ;;  %v673_v22 = vadd.f32 %v672_v7, %v1932_v24 }
 0x16d   : > { %v719_v54 = vmax.f32 %v714_v52, 0.0  ;;  %v728_v56 = vsel %vm306_vm0, %v720_v53, %v723_v51  ;;  %v716_v28 = vadd.f32 %v715_v8, %v673_v22 }
 0x16e   : > { %v737_v60 = vrot.slane %v728_v56, 4  ;;  %v730_v62 = vrot.slane %v728_v56, 2 }
 0x16f   : > { %v724_v55 = vrot.slane %v719_v54, 4  ;;  %1037 = vst [vmem:[#allocation3 - $0x4] sm:$0xf0] %v719_v54 }
 0x171   : > { %v725_v57 = vsel %vm306_vm0, %v723_v51, %v724_v55  ;;  %v740_v58 = vrot.slane %v724_v55, 4  ;;  %v733_v59 = vrot.slane %v724_v55, 2 }
 0x172   : > { %v738_v61 = vrot.slane %v725_v57, 4  ;;  %v731_v63 = vrot.slane %v725_v57, 2  ;;  %v744_v6 = vpack.c.bf16 %v725_v57, %v728_v56 }
 0x174   : > { %v732_v0 = vsel %vm314_vm1, %v730_v62, %v731_v63  ;;  %v734_v1 = vsel %vm314_vm1, %v731_v63, %v733_v59  ;;  %v739_v2 = vsel %vm306_vm0, %v737_v60, %v738_v61  ;;  %v741_v3 = vsel %vm306_vm0, %v738_v61, %v740_v58 }
 0x175   : > { %v745_v4 = vpack.c.bf16 %v734_v1, %v732_v0  ;;  %v746_v5 = vpack.c.bf16 %v741_v3, %v739_v2 }
 0x177   : > { %978 = vmatprep.mubr.bf16.mxu1 %v745_v4  ;;  %1310 = vmatmul.mubr.bf16.vlgmr.msra.gmra.mxu0 %v746_v5 }
 0x178   : > { %979 = vmatmul.mubr.bf16.vlgmr.msra.gmra.mxu1 %v744_v6 }
 0x237   : > { %v1021_v9 = vpop.f32.mrf.mxu0 }
 0x238   : > { %v1278_v10 = vpop.f32.mrf.mxu1 }
 0x239   : > { %v1311_v11 = vpop.f32.mrf.mxu0 }
 0x23a   : > { %v1279_v13 = vpop.f32.mrf.mxu1 }
 0x23b   : > { %v1280_v14 = vadd.f32 %v1279_v13, %v1278_v10  ;;  %v1024_v15 = vpop.f32.mrf.mxu0 }
 0x23c   : > { %v1281_v16 = vpop.f32.mrf.mxu1 }
 0x23d   : > { %v981_v17 = vadd.f32 %v1280_v14, %v1227_v12  ;;  %v1312_v18 = vpop.f32.mrf.mxu0 }
 0x23e   : > { %v1282_v19 = vpop.f32.mrf.mxu1 }
 0x23f   : > { %v1022_v20 = vadd.f32 %v1021_v9, %v981_v17  ;;  %v1283_v21 = vadd.f32 %v1282_v19, %v1281_v16 }
 0x241   : > { %v1028_v23 = vmax.f32 %v1022_v20, 0.0  ;;  %v984_v25 = vadd.f32 %v1283_v21, %v1227_v12 }
 0x243   : > { %v1030_v26 = vadd.f32 %v1028_v23, %v712_v48  ;;  %v1025_v27 = vadd.f32 %v1024_v15, %v984_v25 }
 0x245   : > { %v1032_v29 = vmax.f32 %v1030_v26, 0.0  ;;  %v1029_v30 = vmax.f32 %v1025_v27, 0.0 }
 0x247   : > { %1034 = vst [vmem:[%s1911_s7] sm:$0xff] %v1032_v29  ;;  %v1031_v31 = vadd.f32 %v1029_v30, %v716_v28 }
 0x249   : > { %v1033_v24 = vmax.f32 %v1031_v31, 0.0 }
 0x24b   : > { %1035 = vst [vmem:[%s1911_s7 + $0x8] sm:$0xff] %v1033_v24 }
 0x24c   : > { %1611 = shalt.err (!%p1608_p1)
}
 0x24d   : > { %s1612_s7 = scalar_lea.hbm %s1952_s18, 256  ;;  %s1616_s26 = scalar_lea.hbm %s2051_s5, 2048 }
 0x24e   : > { %p1613_p4 = scmp.ne.s32.totalorder %s1952_s18, %s1612_s7  ;;  %p1617_p11 = scmp.lt.s32.totalorder %s1952_s18, %s2051_s5 }
 0x24f   : > { %p1618_p7 = scmp.lt.s32.totalorder %s1616_s26, %s1612_s7 }
 0x250   : > { %p1614_p6 = pnand %p1613_p4, %p1858_p5 }
 0x251   : > { %p1619_p8 = por %p1618_p7, %p1617_p11 }
 0x252   : > { %p1615_p10 = pneg %p1614_p6 }
 0x254   : > { %p1620_p9 = pnand %p1619_p8, %p1615_p10 }
 0x256   : > { %1623 = shalt.err (!%p1620_p9)
}
 0x257   : > { %s1712_s29 = smov 128   ;;  %s1713_s10 = smov 8  }
 0x258   : > { %1323 = dma.vmem_to_hbm [thread:$0]  (%p1858_p5), %s1954_s3, 256, %s1952_s18, %s1039_s15, %s1712_s29, %s1712_s29, %s1713_s10  }
 0x259 PF: > { %s2052_s1 = sld [smem:[#allocation14_spill]]  ;;  %p1345_p2 = scmp.ge.s32.totalorder %s1698_s25, 2 }
 0x25a   : > { %s2053_s8 = sld [smem:[#allocation15_spill]] }
 0x25f   : > { %s1069_s21 = sand.u32 1, %s2052_s1  }
 0x260   : > { %p2054_p12 = scmp.ne.s32.totalorder %s2053_s8, 0  ;;  %s1070_s22 = scalar_lea.sflag [#allocation6], %s1069_s21 }
 0x262   : > { %p1337_p13 = pnand %p1345_p2, %p2054_p12 }
 0x264   : > { %p1338_p3 = pneg %p1337_p13 }
 0x266   : > { %1665 = dma.done.wait (%p1338_p3), %s1070_s22, 256  }
 0x267   : > { %1667 = vsyncadd (%p1338_p3), %s1070_s22, 4294967040  ;;  %s22_s25 = sadd.s32 1, %s1698_s25   ;;  %s2055_s6 = sld [smem:[#allocation16_spill]] }
 0x268   : > { %p19_p0 = scmp.ge.s32.totalorder %s22_s25, 10   ;;  %s2056_s18 = smov %s1674_s19 }
 0x269   : > { %s2057_s19 = smov %s1678_s20  ;;  %s2058_s20 = smov %s1871_s13 }
 0x26a   : > { %s2059_s21 = smov %s1690_s23  ;;  %s2060_s22 = smov %s1694_s24 }
 0x26b   : > { %s2062_s24 = smov %s2068_s14  ;;  %21 = sbr.rel (!%p19_p0) target bundleno = 13 (0xd), region = 97 }
 0x26d   : > { %s2061_s23 = smov %s2055_s6 }
 0x270   :  { %1075 = vsyncpa [#allocation5], 1 }
 0x271   :  { %1077 = vsyncpa [#allocation5 + $0x1], 1 }
 0x272   :  { %1078 = vsyncpa [#allocation8], 1 }
 0x273   :  { %1079 = vsyncpa [#allocation6], 1 }
 0x274   :  { %1081 = vsyncpa [#allocation6 + $0x1], 1 }

</bundles_post_ra>
